<compile_context>
chip_gen: v6e
topology: v6e:2x2x1
jax: 0.10.0
libtpu: 0.0.40
codegen_flags: <defaults>
</compile_context>

<pallas_src>
import functools

import jax
import jax.numpy as jnp
from jax.experimental import pallas as pl
from jax.experimental.pallas import tpu as pltpu


def _round_up(n, m):
    return ((n + m - 1) // m) * m


def _choose_tm(n_rows):
    """Pick a large batch tile, but keep >= 2 grid steps when possible (v7x 2 TCs)."""
    target = 512
    if n_rows >= 2 * target:
        return target
    half = _round_up(max(1, -(-n_rows // 2)), 8)   # ceil(N/2), sublane-aligned
    return max(8, min(target, half))


def _fused_shortcut_kernel(x_ref, w0_ref, b0_ref, wcat_ref, b1_ref, o_ref, *,
                           precision):
    """size_in != size_out: out = [relu(net), x] @ [w1; ws] + b1 (fused on the MXU)."""
    x = x_ref[...]
    h = jnp.maximum(x, 0.0)                                          # relu(x)
    net = jnp.dot(h, w0_ref[...], precision=precision,
                  preferred_element_type=jnp.float32) + b0_ref[...]
    # Fuse fc_1 and the (bias-free) shortcut into a single contraction:
    # lhs = [relu(net), x]  (tm, size_h + size_in),  wcat = [w1; ws].
    lhs = jnp.concatenate([jnp.maximum(net, 0.0).astype(x.dtype), x], axis=-1)
    out = jnp.dot(lhs, wcat_ref[...], precision=precision,
                  preferred_element_type=jnp.float32) + b1_ref[...]
    o_ref[...] = out.astype(o_ref.dtype)


def _identity_kernel(x_ref, w0_ref, b0_ref, w1_ref, b1_ref, o_ref, *, precision):
    """size_in == size_out: out = x + fc_1(relu(fc_0(relu(x))))."""
    x = x_ref[...]
    h = jnp.maximum(x, 0.0)
    net = jnp.dot(h, w0_ref[...], precision=precision,
                  preferred_element_type=jnp.float32) + b0_ref[...]
    dx = jnp.dot(jnp.maximum(net, 0.0).astype(w1_ref.dtype), w1_ref[...],
                 precision=precision,
                 preferred_element_type=jnp.float32) + b1_ref[...]
    o_ref[...] = (x.astype(jnp.float32) + dx).astype(o_ref.dtype)


def resnet_block_fc(x, w0, b0, w1, b1, ws=None, *, tm=None,
                    use_bf16_matmul=False, precision=None):
    """ResnetBlockFC forward with a Pallas TPU kernel.

    x  : (N, size_in)        f32
    w0 : (size_in, size_h)   f32   (transposed from PyTorch's (out, in))
    b0 : (1, size_h)         f32
    w1 : (size_h, size_out)  f32
    b1 : (1, size_out)       f32
    ws : (size_in, size_out) f32 or None (identity shortcut when size_in == size_out)

    use_bf16_matmul : cast x / weights to bf16 for the MXU (f32 accumulate).
    precision       : optional jax.lax.Precision for the dots (e.g. HIGHEST for
                      exact-f32 parity with the PyTorch module).
    """
    N, size_in = x.shape
    size_h = w0.shape[1]
    size_out = w1.shape[1]
    assert w0.shape == (size_in, size_h)
    assert b0.shape == (1, size_h)
    assert w1.shape == (size_h, size_out)
    assert b1.shape == (1, size_out)
    if ws is None:
        assert size_in == size_out, "identity shortcut requires size_in == size_out"
    else:
        assert ws.shape == (size_in, size_out)

    out_dtype = x.dtype
    has_shortcut = ws is not None

    # --- batch tiling (pad N so tm need not divide the caller's batch) ---
    if tm is None:
        tm = _choose_tm(N)
    tm = max(8, _round_up(min(tm, _round_up(N, 8)), 8))
    n_pad = _round_up(N, tm)
    x_in = x if n_pad == N else jnp.pad(x, ((0, n_pad - N), (0, 0)))
    grid = (n_pad // tm,)

    # --- weight prep: fuse fc_1 + shortcut weights into one (K, size_out) slab ---
    wcat = jnp.concatenate([w1, ws], axis=0) if has_shortcut else w1
    k_cat = wcat.shape[0]

    if use_bf16_matmul:
        x_in = x_in.astype(jnp.bfloat16)
        w0 = w0.astype(jnp.bfloat16)
        wcat = wcat.astype(jnp.bfloat16)
    b0 = b0.astype(jnp.float32)
    b1 = b1.astype(jnp.float32)

    x_spec = pl.BlockSpec((tm, size_in), lambda i: (i, 0))
    o_spec = pl.BlockSpec((tm, size_out), lambda i: (i, 0))
    # Weights/biases are small and have constant index_maps -> stay resident.
    w0_spec = pl.BlockSpec((size_in, size_h), lambda i: (0, 0))
    b0_spec = pl.BlockSpec((1, size_h), lambda i: (0, 0))
    wc_spec = pl.BlockSpec((k_cat, size_out), lambda i: (0, 0))
    b1_spec = pl.BlockSpec((1, size_out), lambda i: (0, 0))

    kernel = functools.partial(
        _fused_shortcut_kernel if has_shortcut else _identity_kernel,
        precision=precision)

    # --- explicit VMEM budget (double-buffered streams + resident weights +
    #     in-kernel temporaries), capped under v7x's 64 MiB physical VMEM ---
    in_bytes = 2 if use_bf16_matmul else 4
    vmem_bytes = (
        2 * tm * size_in * in_bytes                       # x tile double buffer
        + 2 * tm * size_out * 4                           # out tile double buffer
        + 2 * (size_in * size_h + k_cat * size_out) * in_bytes  # weights (2 bufs)
        + 2 * (size_h + size_out) * 4                     # biases (2 bufs)
        + tm * (size_in + size_h + k_cat + size_out) * 4  # temporaries (relu/net/lhs/out)
    )
    vmem_limit = min(64 * 1024 * 1024,
                     max(16 * 1024 * 1024, int(vmem_bytes * 1.5) + (2 << 20)))

    out = pl.pallas_call(
        kernel,
        out_shape=jax.ShapeDtypeStruct((n_pad, size_out), out_dtype),
        grid_spec=pltpu.PrefetchScalarGridSpec(
            num_scalar_prefetch=0,
            grid=grid,
            in_specs=[x_spec, w0_spec, b0_spec, wc_spec, b1_spec],
            out_specs=o_spec,
        ),
        compiler_params=pltpu.CompilerParams(
            dimension_semantics=("parallel",),
            vmem_limit_bytes=vmem_limit,
        ),
    )(x_in, w0, b0, wcat, b1)

    if n_pad != N:
        out = out[:N]
    return out


def _reference(x, w0, b0, w1, b1, ws, precision=None):
    """Pure-JAX reference matching the PyTorch forward exactly."""
    net = jnp.dot(jnp.maximum(x, 0.0), w0, precision=precision) + b0
    dx = jnp.dot(jnp.maximum(net, 0.0), w1, precision=precision) + b1
    x_s = x if ws is None else jnp.dot(x, ws, precision=precision)
    return x_s + dx


if __name__ == "__main__":
    key = jax.random.PRNGKey(0)
    keys = jax.random.split(key, 11)

    # --- Case 1: size_in != size_out -> learned (bias-free) linear shortcut ---
    size_in, size_out = 64, 128
    size_h = min(size_in, size_out)            # module default
    N = 200                                    # non-multiple of the tile: exercises padding

    x = jax.random.normal(keys[0], (N, size_in), jnp.float32)
    w0 = jax.random.normal(keys[1], (size_in, size_h), jnp.float32) * 0.05
    b0 = jax.random.normal(keys[2], (1, size_h), jnp.float32) * 0.01
    # NOTE: the module zero-inits fc_1.weight; use a NONZERO w1 so the fc_1
    # matmul path is actually exercised numerically by this check.
    w1 = jax.random.normal(keys[3], (size_h, size_out), jnp.float32) * 0.05
    b1 = jax.random.normal(keys[4], (1, size_out), jnp.float32) * 0.01
    ws = jax.random.normal(keys[5], (size_in, size_out), jnp.float32) * 0.05

    out = jax.block_until_ready(resnet_block_fc(x, w0, b0, w1, b1, ws))
    ref = _reference(x, w0, b0, w1, b1, ws)
    assert out.shape == (N, size_out)
    # Tolerance accounts for the fused-vs-separate contraction ordering and
    # the TPU's default matmul precision (pass precision=HIGHEST for parity).
    assert jnp.allclose(out, ref, atol=1e-3, rtol=1e-3), "shortcut path mismatch"

    # --- Case 2: size_in == size_out -> identity shortcut ---
    size_in2 = size_out2 = size_h2 = 64
    N2 = 128
    x2 = jax.random.normal(keys[6], (N2, size_in2), jnp.float32)
    w0b = jax.random.normal(keys[7], (size_in2, size_h2), jnp.float32) * 0.05
    b0b = jax.random.normal(keys[8], (1, size_h2), jnp.float32) * 0.01
    w1b = jax.random.normal(keys[9], (size_h2, size_out2), jnp.float32) * 0.05
    b1b = jax.random.normal(keys[10], (1, size_out2), jnp.float32) * 0.01

    out2 = jax.block_until_ready(resnet_block_fc(x2, w0b, b0b, w1b, b1b, None))
    ref2 = _reference(x2, w0b, b0b, w1b, b1b, None)
    assert out2.shape == (N2, size_out2)
    assert jnp.allclose(out2, ref2, atol=1e-3, rtol=1e-3), "identity path mismatch"

    print("KERNEL_OK")
</pallas_src>

<mosaic_0001>
module attributes {stable_mosaic.version = 11 : i64} {
  func.func @_fused_shortcut_kernel(%arg0: i32, %arg1: memref<104x64xf32, #tpu.memory_space<vmem>>, %arg2: memref<64x64xf32, #tpu.memory_space<vmem>>, %arg3: memref<1x64xf32, #tpu.memory_space<vmem>>, %arg4: memref<128x128xf32, #tpu.memory_space<vmem>>, %arg5: memref<1x128xf32, #tpu.memory_space<vmem>>, %arg6: memref<104x128xf32, #tpu.memory_space<vmem>>) attributes {dimension_semantics = [#tpu.dimension_semantics<parallel>], iteration_bounds = array<i64: 2>, scalar_prefetch = 0 : i64, scratch_operands = 0 : i64, tpu.core_type = #tpu.core_type<tc>, window_params = [{transform_indices = @transform_0, window_bounds = array<i64: 104, 64>}, {pipeline_mode = #tpu.pipeline_mode<synchronous>, transform_indices = @transform_1, window_bounds = array<i64: 64, 64>}, {pipeline_mode = #tpu.pipeline_mode<synchronous>, transform_indices = @transform_2, window_bounds = array<i64: 1, 64>}, {pipeline_mode = #tpu.pipeline_mode<synchronous>, transform_indices = @transform_3, window_bounds = array<i64: 128, 128>}, {pipeline_mode = #tpu.pipeline_mode<synchronous>, transform_indices = @transform_4, window_bounds = array<i64: 1, 128>}, {transform_indices = @transform_5, window_bounds = array<i64: 104, 128>}]} {
    %c0 = arith.constant 0 : index
    %c0_0 = arith.constant 0 : index
    %0 = vector.load %arg1[%c0, %c0_0] : memref<104x64xf32, #tpu.memory_space<vmem>>, vector<104x64xf32>
    %cst = arith.constant 0.000000e+00 : f32
    %1 = vector.broadcast %cst : f32 to vector<104x64xf32>
    %2 = arith.maximumf %0, %1 : vector<104x64xf32>
    %c0_1 = arith.constant 0 : index
    %c0_2 = arith.constant 0 : index
    %3 = vector.load %arg2[%c0_1, %c0_2] : memref<64x64xf32, #tpu.memory_space<vmem>>, vector<64x64xf32>
    %cst_3 = arith.constant dense<0.000000e+00> : vector<104x64xf32>
    %4 = tpu.matmul %2, %3, %cst_3 {dimension_numbers = #tpu.dot_dimension_numbers<[1], [0], [0], [1], [0, 0, 1, 1], [], []>} : vector<104x64xf32>, vector<64x64xf32>, vector<104x64xf32> -> vector<104x64xf32>
    %c0_4 = arith.constant 0 : index
    %c0_5 = arith.constant 0 : index
    %5 = vector.load %arg3[%c0_4, %c0_5] : memref<1x64xf32, #tpu.memory_space<vmem>>, vector<1x64xf32>
    %6 = vector.broadcast %5 : vector<1x64xf32> to vector<104x64xf32>
    %7 = arith.addf %4, %6 : vector<104x64xf32>
    %cst_6 = arith.constant 0.000000e+00 : f32
    %8 = vector.broadcast %cst_6 : f32 to vector<104x64xf32>
    %9 = arith.maximumf %7, %8 : vector<104x64xf32>
    %10 = tpu.concatenate %9, %0 in 1 : vector<104x64xf32>, vector<104x64xf32> -> vector<104x128xf32>
    %c0_7 = arith.constant 0 : index
    %c0_8 = arith.constant 0 : index
    %11 = vector.load %arg4[%c0_7, %c0_8] : memref<128x128xf32, #tpu.memory_space<vmem>>, vector<128x128xf32>
    %cst_9 = arith.constant dense<0.000000e+00> : vector<104x128xf32>
    %12 = tpu.matmul %10, %11, %cst_9 {dimension_numbers = #tpu.dot_dimension_numbers<[1], [0], [0], [1], [0, 0, 1, 1], [], []>} : vector<104x128xf32>, vector<128x128xf32>, vector<104x128xf32> -> vector<104x128xf32>
    %c0_10 = arith.constant 0 : index
    %c0_11 = arith.constant 0 : index
    %13 = vector.load %arg5[%c0_10, %c0_11] : memref<1x128xf32, #tpu.memory_space<vmem>>, vector<1x128xf32>
    %14 = vector.broadcast %13 : vector<1x128xf32> to vector<104x128xf32>
    %15 = arith.addf %12, %14 : vector<104x128xf32>
    %c0_12 = arith.constant 0 : index
    %c0_13 = arith.constant 0 : index
    %16 = vector.load %arg6[%c0_12, %c0_13] : memref<104x128xf32, #tpu.memory_space<vmem>>, vector<104x128xf32>
    tpu.vector_store %arg6[%c0_12, %c0_13], %15 {strides = array<i32>} : memref<104x128xf32, #tpu.memory_space<vmem>>, vector<104x128xf32>,
    return
  }
  func.func @transform_0(%arg0: i32) -> (i32, i32) {
    %c0_i32 = arith.constant 0 : i32
    %c0_i32_0 = arith.constant 0 : i32
    return %arg0, %c0_i32 : i32, i32
  }
  func.func @transform_1(%arg0: i32) -> (i32, i32) {
    %c0_i32 = arith.constant 0 : i32
    %c0_i32_0 = arith.constant 0 : i32
    %c0_i32_1 = arith.constant 0 : i32
    return %c0_i32, %c0_i32_0 : i32, i32
  }
  func.func @transform_2(%arg0: i32) -> (i32, i32) {
    %c0_i32 = arith.constant 0 : i32
    %c0_i32_0 = arith.constant 0 : i32
    %c0_i32_1 = arith.constant 0 : i32
    return %c0_i32, %c0_i32_0 : i32, i32
  }
  func.func @transform_3(%arg0: i32) -> (i32, i32) {
    %c0_i32 = arith.constant 0 : i32
    %c0_i32_0 = arith.constant 0 : i32
    %c0_i32_1 = arith.constant 0 : i32
    return %c0_i32, %c0_i32_0 : i32, i32
  }
  func.func @transform_4(%arg0: i32) -> (i32, i32) {
    %c0_i32 = arith.constant 0 : i32
    %c0_i32_0 = arith.constant 0 : i32
    %c0_i32_1 = arith.constant 0 : i32
    return %c0_i32, %c0_i32_0 : i32, i32
  }
  func.func @transform_5(%arg0: i32) -> (i32, i32) {
    %c0_i32 = arith.constant 0 : i32
    %c0_i32_0 = arith.constant 0 : i32
    return %arg0, %c0_i32 : i32, i32
  }
}

</mosaic_0001>

<bundles_post_ra>
// kernel: tpu_custom_call.1
= control target key start
LH: loop header
LB: loop body
LE: loop exit
PB: predicated region body
PF: predicated region fallthrough
CT: control target
= control target key end

     0   :  { %10 = vsyncpa [#allocation3], 0  ;;  %s1568_s0 = inlined_call_operand.vmem [shape: f32[208,64], index: 0, kind: input, shape index: {}]   ;;  %s1569_s1 = inlined_call_operand.vmem [shape: f32[64,64], index: 1, kind: input, shape index: {}]   ;;  %s1570_s2 = inlined_call_operand.vmem [shape: f32[1,64], index: 2, kind: input, shape index: {}]   ;;  %s1571_s3 = inlined_call_operand.vmem [shape: f32[128,128], index: 3, kind: input, shape index: {}]   ;;  %s1572_s4 = inlined_call_operand.vmem [shape: f32[1,128], index: 4, kind: input, shape index: {}]   ;;  %s1573_s5 = inlined_call_operand.hbm [shape: f32[208,128], index: 5, kind: output, shape index: {}]  }
   0x1   :  { %12 = vsyncpa [#allocation3 + $0x1], 0  ;;  %s1142_s18 = smov 0   ;;  %s1144_s19 = smov 0  }
   0x2   :  { %s1146_s20 = smov 0   ;;  %s1148_s21 = smov 0  }
   0x3 LB: > { %s1163_s22 = sadd.s32 4294967295, %s1104_s21   ;;  %s757_s23 = sadd.s32 4294967294, %s1104_s21   ;;  %s1104_s21 = sphi %s1148_s21, %s1579_s21   ;;  %s1100_s20 = sphi %s1146_s20, %s1578_s20   ;;  %s1096_s19 = sphi %s1144_s19, %s1577_s19   ;;  %s1092_s18 = sphi %s1142_s18, %s1576_s18  }
   0x4   : > { %s1167_s24 = sadd.s32 1, %s1104_s21   ;;  %s135_s25 = sadd.s32 1, %s1100_s20 }
   0x5   : > { %s132_s26 = ssub.s32 %s1104_s21, %s1167_s24  ;;  %p145_p0 = scmp.ne.s32.totalorder %s1100_s20, %s1096_s19 }
   0x6   : > { %p133_p1 = scmp.eq.s32.totalorder %s132_s26, 0  ;;  %p146_p2 = scmp.eq.s32.totalorder %s1163_s22, 1 }
   0x7   : > { %p151_p3 = scmp.ne.s32.totalorder %s1096_s19, %s1092_s18  ;;  %p152_p4 = scmp.eq.s32.totalorder %s757_s23, 1 }
   0x8   : > { %s1178_s27 = scalar_select %p133_p1, %s1100_s20, %s135_s25  }
   0x9   : > { %p1180_p5 = por %p146_p2, %p145_p0  ;;  %p1184_p6 = por %p152_p4, %p151_p3 }
   0xa   : > { %p760_p7 = scmp.ge.s32.totalorder %s1104_s21, 1  ;;  %p191_p8 = scmp.lt.s32.totalorder %s1104_s21, 3 }
   0xc   : > { %p192_p9 = pnand %p760_p7, %p191_p8 }
   0xd   : > { %s219_s7 = smul.u32 (!%p192_p9), 13, %s1163_s22  ;;  %s1108_s12 = smov (!%p192_p9), 64  }
   0xe   : > { %195 = sbr.rel (%p192_p9) target bundleno = 491 (0x1eb), region = 40  ;;  %s216_s14 = sand.u32 (!%p192_p9), 1, %s1096_s19  }
   0xf   : > { %p220_p10 = scmp.lt.s32.totalorder (!%p192_p9), %s219_s7, 25  ;;  %s989_s15 = smul.u32 (!%p192_p9), 104, %s216_s14 }
  0x10   : > { %s1109_s9 = smov (!%p192_p9), [#allocation2]  }
  0x11   : > { %s1502_s17 = scalar_lea.vmem (!%p192_p9), [#allocation2], %s989_s15 }
  0x12   : > { %s695_s25 = sshll.u32 (!%p192_p9), %s1502_s17, 4  ;;  %s1523_s25 = int_to_ptr.vmem [resolvable:$true] %s695_s25 }
  0x13   : > { %v259_v0 = vld [vmem:[%s1569_s1 + $0x38] sm:$0xff]  ;;  %v1106_v1 = vmov 0.0   ;;  %v258_v2 = vld [vmem:[%s1569_s1 + $0x30] sm:$0xff]  ;;  %vm1107_vm0 = vmmov 0   ;;  %v257_v4 = vld [vmem:[%s1569_s1 + $0x28] sm:$0xff]  ;;  %s1581_s7 = smov (!%p220_p10, %s219_s7), 25 }
  0x14   : > { %831 = vmatprep.subr.mxu0 %v1106_v1  ;;  %847 = vmatprep.mubr.msk.f32.mxu0 %vm1107_vm0, %v1106_v1  ;;  %v530_v3 = vld [vmem:[%s1571_s3 + $0x78] sm:$0xff]  ;;  %v1211_v5 = vld [vmem:[%s1571_s3 + $0x70] sm:$0xff]  ;;  %v256_v6 = vld [vmem:[%s1569_s1 + $0x20] sm:$0xff]  ;;  %s761_s23 = sshll.u32 %s1581_s7, 3  ;;  %vm267_vm1 = vcmask 523264   ;;  %s1044_s8 = scalar_lea.vmem %s1523_s25, 1664 }
  0x15   : > { %832 = vmatpush3.msra.mxu0 %v259_v0  ;;  %957 = vmatprep.subr.mxu1 %v1106_v1  ;;  %v1222_v7 = vld [vmem:[%s1571_s3 + $0x68] sm:$0xff]  ;;  %v255_v8 = vld [vmem:[%s1569_s1 + $0x18] sm:$0xff]  ;;  %s1232_s10 = scalar_lea.vmem %s1568_s0, %s761_s23  ;;  %v254_v10 = vld [vmem:[%s1569_s1 + $0x10] sm:$0xff]  ;;  %s780_s23 = smul.u32 1664, %s1163_s22 }
  0x16   : > { %833 = vmatprep.subr.mxu0 %v1106_v1  ;;  %973 = vmatpush3.msra.mxu1 %v530_v3  ;;  %v228_v9 = vld [vmem:[%s1232_s10 + $0x10] sm:$0xff]  ;;  %v1242_v11 = vld [vmem:[%s1232_s10 + $0x20] sm:$0xff]  ;;  %v253_v14 = vld [vmem:[%s1569_s1 + $0x8] sm:$0xff]  ;;  %s1528_s22 = scalar_lea.sflag [#allocation3], %s216_s14  ;;  %p1045_p11 = scmp.ne.s32.totalorder %s1523_s25, %s1044_s8 }
  0x17   : > { %834 = vmatpush3.msra.mxu0 %v258_v2  ;;  %958 = vmatprep.subr.mxu1 %v1106_v1  ;;  %v226_v12 = vld [vmem:[%s1232_s10] sm:$0xff]  ;;  %v229_v15 = vld [vmem:[%s1232_s10 + $0x18] sm:$0xff]  ;;  %v1265_v18 = vld [vmem:[%s1232_s10 + $0x28] sm:$0xff]  ;;  %v241_v26 = vmax.f32 %v228_v9, 0.0  ;;  %v243_v36 = vmax.f32 %v1242_v11, 0.0  ;;  %s1521_s6 = scalar_lea.hbm %s1573_s5, %s780_s23  ;;  %s1048_s7 = sshll.u32 %s1109_s9, 4  ;;  %s1049_s7 = int_to_ptr.vmem [resolvable:$false] %s1048_s7 }
  0x18   : > { %835 = vmatprep.subr.mxu0 %v1106_v1  ;;  %974 = vmatpush3.msra.mxu1 %v1211_v5  ;;  %v1251_v13 = vld [vmem:[%s1571_s3 + $0x60] sm:$0xff]  ;;  %v239_v17 = vmax.f32 %v226_v12, 0.0  ;;  %v227_v19 = vld [vmem:[%s1232_s10 + $0x8] sm:$0xff]  ;;  %v526_v20 = vld [vmem:[%s1571_s3 + $0x58] sm:$0xff]  ;;  %v242_v33 = vmax.f32 %v229_v15, 0.0  ;;  %v244_v39 = vmax.f32 %v1265_v18, 0.0  ;;  %p1046_p12 = pnand %p1045_p11, %p1180_p5  ;;  %p1051_p0 = scmp.lt.s32.totalorder %s1523_s25, %s1049_s7 }
  0x19   : > { %836 = vmatpush3.msra.mxu0 %v257_v4  ;;  %959 = vmatprep.subr.mxu1 %v1106_v1  ;;  %v252_v16 = vld [vmem:[%s1569_s1] sm:$0xff]  ;;  %v1276_v21 = vld [vmem:[%s1232_s10 + $0x30] sm:$0xff]  ;;  %v240_v22 = vmax.f32 %v227_v19, 0.0  ;;  %v1281_v23 = vld [vmem:[%s1232_s10 + $0x38] sm:$0xff] }
  0x1a   : > { %837 = vmatprep.subr.mxu0 %v1106_v1  ;;  %975 = vmatpush3.msra.mxu1 %v1222_v7  ;;  %v525_v24 = vld [vmem:[%s1571_s3 + $0x50] sm:$0xff]  ;;  %v1294_v25 = vld [vmem:[%s1232_s10 + $0x40] sm:$0xff]  ;;  %v1299_v27 = vld [vmem:[%s1232_s10 + $0x48] sm:$0xff]  ;;  %v245_v41 = vmax.f32 %v1276_v21, 0.0  ;;  %v246_v43 = vmax.f32 %v1281_v23, 0.0  ;;  %p1047_p13 = pneg %p1046_p12 }
  0x1b   : > { %838 = vmatpush3.msra.mxu0 %v256_v6  ;;  %960 = vmatprep.subr.mxu1 %v1106_v1  ;;  %v1302_v28 = vld [vmem:[%s1232_s10 + $0x58] sm:$0xff]  ;;  %v524_v30 = vld [vmem:[%s1571_s3 + $0x48] sm:$0xff]  ;;  %v1316_v31 = vld [vmem:[%s1232_s10 + $0x50] sm:$0xff]  ;;  %v247_v45 = vmax.f32 %v1294_v25, 0.0  ;;  %v248_v46 = vmax.f32 %v1299_v27, 0.0 }
  0x1c   : > { %839 = vmatprep.subr.mxu0 %v1106_v1  ;;  %467 = vrot.lane.b32.xlu0 %v228_v9, %s1108_s12  ;;  %v1034_v29 = vpack.i.bf16 %v1302_v28, %v226_v12  ;;  %v1319_v32 = vld [vmem:[%s1232_s10 + $0x60] sm:$0xff]  ;;  %v522_v37 = vld [vmem:[%s1571_s3 + $0x38] sm:$0xff]  ;;  %v521_v38 = vld [vmem:[%s1571_s3 + $0x30] sm:$0xff]  ;;  %v249_v47 = vmax.f32 %v1316_v31, 0.0  ;;  %v250_v48 = vmax.f32 %v1302_v28, 0.0  ;;  %s1050_s10 = scalar_lea.vmem %s1049_s7, 3328 }
  0x1d   : > { %840 = vmatpush3.msra.mxu0 %v255_v8  ;;  %471 = vrot.lane.b32.xlu1 %v1242_v11, %s1108_s12  ;;  %v1039_v34 = vpack.i.bf16 %v1319_v32, %v227_v19  ;;  %v523_v35 = vld [vmem:[%s1571_s3 + $0x40] sm:$0xff]  ;;  %v520_v40 = vld [vmem:[%s1571_s3 + $0x28] sm:$0xff]  ;;  %v518_v44 = vld [vmem:[%s1571_s3 + $0x18] sm:$0xff]  ;;  %v251_v49 = vmax.f32 %v1319_v32, 0.0  ;;  %p1052_p1 = scmp.lt.s32.totalorder %s1050_s10, %s1044_s8 }
  0x1e   : > { %841 = vmatprep.subr.mxu0 %v1106_v1  ;;  %976 = vmatpush3.msra.mxu1 %v1251_v13  ;;  %v519_v42 = vld [vmem:[%s1571_s3 + $0x20] sm:$0xff]  ;;  %v517_v50 = vld [vmem:[%s1571_s3 + $0x10] sm:$0xff]  ;;  %v516_v51 = vld [vmem:[%s1571_s3 + $0x8] sm:$0xff] }
  0x1f   : > { %842 = vmatpush3.msra.mxu0 %v254_v10  ;;  %961 = vmatprep.subr.mxu1 %v1106_v1  ;;  %v515_v52 = vld [vmem:[%s1571_s3] sm:$0xff]  ;;  %p1053_p2 = por %p1052_p1, %p1051_p0 }
  0x20   : > { %843 = vmatprep.subr.mxu0 %v1106_v1  ;;  %469 = vrot.lane.b32.xlu0 %v229_v15, %s1108_s12  ;;  %v1434_v62 = vld [vmem:[%s1570_s2] ss:$0 sm:$0xff] }
  0x21   : > { %844 = vmatpush3.msra.mxu0 %v253_v14  ;;  %473 = vrot.lane.b32.xlu1 %v1265_v18, %s1108_s12  ;;  %p1054_p3 = pnand %p1053_p2, %p1047_p13 }
  0x22   : > { %845 = vmatprep.subr.mxu0 %v1106_v1  ;;  %977 = vmatpush3.msra.mxu1 %v526_v20 }
  0x23   : > { %846 = vmatpush3.msra.mxu0 %v252_v16  ;;  %962 = vmatprep.subr.mxu1 %v1106_v1 }
  0x24   : > { %848 = vmatmul.mubr.msk.f32.vlgmr.msra.gmra.mxu0 %vm267_vm1, %v239_v17  ;;  %475 = vrot.lane.b32.xlu0 %v1276_v21, %s1108_s12 }
  0x25   : > { %850 = vmatprep.mubr.msk.f32.mxu0 %vm1107_vm0, %v1106_v1  ;;  %477 = vrot.lane.b32.xlu1 %v1281_v23, %s1108_s12 }
  0x26   : > { %886 = vmatprep.subr.mxu0 %v1106_v1  ;;  %978 = vmatpush3.msra.mxu1 %v525_v24 }
  0x27   : > { %887 = vmatpush3.msra.mxu0 %v530_v3  ;;  %963 = vmatprep.subr.mxu1 %v1106_v1 }
  0x28   : > { %851 = vmatmul.mubr.msk.f32.gmra.mxu0 %vm267_vm1, %v240_v22  ;;  %479 = vrot.lane.b32.xlu0 %v1294_v25, %s1108_s12 }
  0x29   : > { %853 = vmatprep.mubr.msk.f32.mxu0 %vm1107_vm0, %v1106_v1  ;;  %481 = vrot.lane.b32.xlu1 %v1299_v27, %s1108_s12 }
  0x2a   : > { %888 = vmatprep.subr.mxu0 %v1106_v1  ;;  %979 = vmatpush3.msra.mxu1 %v524_v30 }
  0x2b   : > { %889 = vmatpush3.msra.mxu0 %v1211_v5  ;;  %964 = vmatprep.subr.mxu1 %v1106_v1 }
  0x2c   : > { %854 = vmatmul.mubr.msk.f32.gmra.mxu0 %vm267_vm1, %v241_v26  ;;  %483 = vrot.lane.b32.xlu0 %v1316_v31, %s1108_s12 }
  0x2d   : > { %856 = vmatprep.mubr.msk.f32.mxu0 %vm1107_vm0, %v1106_v1  ;;  %1035 = vrot.lane.b32.xlu1 %v1034_v29, %s1108_s12 }
  0x2e   : > { %890 = vmatprep.subr.mxu0 %v1106_v1  ;;  %980 = vmatpush3.msra.mxu1 %v523_v35 }
  0x2f   : > { %891 = vmatpush3.msra.mxu0 %v1222_v7  ;;  %965 = vmatprep.subr.mxu1 %v1106_v1 }
  0x30   : > { %857 = vmatmul.mubr.msk.f32.gmra.mxu0 %vm267_vm1, %v242_v33  ;;  %1040 = vrot.lane.b32.xlu0 %v1039_v34, %s1108_s12 }
  0x31   : > { %859 = vmatprep.mubr.msk.f32.mxu0 %vm1107_vm0, %v1106_v1  ;;  %892 = vmatprep.subr.mxu0 %v1106_v1 }
  0x32   : > { %893 = vmatpush3.msra.mxu0 %v1251_v13  ;;  %981 = vmatpush3.msra.mxu1 %v522_v37 }
  0x33   : > { %894 = vmatprep.subr.mxu0 %v1106_v1  ;;  %966 = vmatprep.subr.mxu1 %v1106_v1 }
  0x34   : > { %860 = vmatmul.mubr.msk.f32.gmra.mxu0 %vm267_vm1, %v243_v36  ;;  %982 = vmatpush3.msra.mxu1 %v521_v38 }
  0x35   : > { %862 = vmatprep.mubr.msk.f32.mxu0 %vm1107_vm0, %v1106_v1  ;;  %895 = vmatpush3.msra.mxu0 %v526_v20 }
  0x36   : > { %896 = vmatprep.subr.mxu0 %v1106_v1  ;;  %967 = vmatprep.subr.mxu1 %v1106_v1 }
  0x37   : > { %897 = vmatpush3.msra.mxu0 %v525_v24  ;;  %983 = vmatpush3.msra.mxu1 %v520_v40 }
  0x38   : > { %863 = vmatmul.mubr.msk.f32.gmra.mxu0 %vm267_vm1, %v244_v39  ;;  %898 = vmatprep.subr.mxu0 %v1106_v1 }
  0x39   : > { %865 = vmatprep.mubr.msk.f32.mxu0 %vm1107_vm0, %v1106_v1  ;;  %899 = vmatpush3.msra.mxu0 %v524_v30 }
  0x3a   : > { %900 = vmatprep.subr.mxu0 %v1106_v1  ;;  %968 = vmatprep.subr.mxu1 %v1106_v1 }
  0x3b   : > { %901 = vmatpush3.msra.mxu0 %v523_v35  ;;  %984 = vmatpush3.msra.mxu1 %v519_v42 }
  0x3c   : > { %866 = vmatmul.mubr.msk.f32.gmra.mxu0 %vm267_vm1, %v245_v41  ;;  %902 = vmatprep.subr.mxu0 %v1106_v1 }
  0x3d   : > { %868 = vmatprep.mubr.msk.f32.mxu0 %vm1107_vm0, %v1106_v1  ;;  %903 = vmatpush3.msra.mxu0 %v522_v37 }
  0x3e   : > { %904 = vmatprep.subr.mxu0 %v1106_v1  ;;  %969 = vmatprep.subr.mxu1 %v1106_v1 }
  0x3f   : > { %905 = vmatpush3.msra.mxu0 %v521_v38  ;;  %985 = vmatpush3.msra.mxu1 %v518_v44 }
  0x40   : > { %869 = vmatmul.mubr.msk.f32.gmra.mxu0 %vm267_vm1, %v246_v43  ;;  %906 = vmatprep.subr.mxu0 %v1106_v1 }
  0x41   : > { %871 = vmatprep.mubr.msk.f32.mxu0 %vm1107_vm0, %v1106_v1  ;;  %907 = vmatpush3.msra.mxu0 %v520_v40 }
  0x42   : > { %908 = vmatprep.subr.mxu0 %v1106_v1  ;;  %970 = vmatprep.subr.mxu1 %v1106_v1 }
  0x43   : > { %909 = vmatpush3.msra.mxu0 %v519_v42  ;;  %924 = vmatprep.mubr.msk.f32.mxu1 %vm1107_vm0, %v1106_v1 }
  0x44   : > { %872 = vmatmul.mubr.msk.f32.gmra.mxu0 %vm267_vm1, %v247_v45  ;;  %910 = vmatprep.subr.mxu0 %v1106_v1 }
  0x45   : > { %874 = vmatprep.mubr.msk.f32.mxu0 %vm1107_vm0, %v1106_v1  ;;  %911 = vmatpush3.msra.mxu0 %v518_v44 }
  0x46   : > { %912 = vmatprep.subr.mxu0 %v1106_v1  ;;  %986 = vmatpush3.msra.mxu1 %v517_v50 }
  0x47   : > { %913 = vmatpush3.msra.mxu0 %v517_v50  ;;  %971 = vmatprep.subr.mxu1 %v1106_v1 }
  0x48   : > { %875 = vmatmul.mubr.msk.f32.gmra.mxu0 %vm267_vm1, %v248_v46  ;;  %914 = vmatprep.subr.mxu0 %v1106_v1 }
  0x49   : > { %877 = vmatprep.mubr.msk.f32.mxu0 %vm1107_vm0, %v1106_v1  ;;  %915 = vmatpush3.msra.mxu0 %v516_v51 }
  0x4a   : > { %987 = vmatpush3.msra.mxu1 %v516_v51  ;;  %916 = vmatprep.subr.mxu0 %v1106_v1 }
  0x4b   : > { %972 = vmatprep.subr.mxu1 %v1106_v1  ;;  %917 = vmatpush3.msra.mxu0 %v515_v52 }
  0x4c   : > { %878 = vmatmul.mubr.msk.f32.gmra.mxu0 %vm267_vm1, %v249_v47  ;;  %988 = vmatpush3.msra.mxu1 %v515_v52 }
  0x4d   : > { %880 = vmatprep.mubr.msk.f32.mxu0 %vm1107_vm0, %v1106_v1 }
  0x50   : > { %881 = vmatmul.mubr.msk.f32.gmra.mxu0 %vm267_vm1, %v250_v48 }
  0x51   : > { %883 = vmatprep.mubr.msk.f32.mxu0 %vm1107_vm0, %v1106_v1 }
  0x54   : > { %884 = vmatmul.mubr.msk.f32.gmra.mxu0 %vm267_vm1, %v251_v49 }
  0x55   : > { %918 = vmatprep.mubr.msk.f32.mxu0 %vm1107_vm0, %v1106_v1 }
  0x8e   : > { %v468_v53 = vpop.permute.xlu0 %467 }
  0x8f   : > { %v472_v54 = vpop.permute.xlu1 %471 }
  0x92   : > { %v470_v55 = vpop.permute.xlu0 %469 }
  0x93   : > { %v474_v56 = vpop.permute.xlu1 %473 }
  0x96   : > { %v476_v57 = vpop.permute.xlu0 %475 }
  0x97   : > { %v1423_v58 = vpop.permute.xlu1 %477 }
  0x9a   : > { %v1425_v59 = vpop.permute.xlu0 %479 }
  0x9b   : > { %v1427_v60 = vpop.permute.xlu1 %481 }
  0x9e   : > { %v1429_v61 = vpop.permute.xlu0 %483 }
  0x9f   : > { %v1436_v63 = vpop.permute.xlu1 %1035 }
  0xa0   : > { %v1037_v3 = vunpack.i.l.bf16 %v1436_v63 }
  0xa2   : > { %v1440_v5 = vpop.permute.xlu0 %1040 }
  0xa3   : > { %v1042_v10 = vunpack.i.l.bf16 %v1440_v5 }
  0xe4   : > { %v373_v0 = vpop.f32.mrf.mxu0 }
  0xe5   : > { %v374_v2 = vadd.f32 %v1434_v62, %v373_v0 }
  0xe6   : > { %v849_v4 = vpop.f32.mrf.mxu0 }
  0xe7   : > { %v437_v6 = vmax.f32 %v374_v2, 0.0 }
  0xe8   : > { %v378_v7 = vpop.f32.mrf.mxu0 }
  0xe9   : > { %v502_v8 = vsel %vm267_vm1, %v437_v6, %v1037_v3  ;;  %v379_v9 = vadd.f32 %v1434_v62, %v378_v7  ;;  %v1043_v6 = vunpack.i.h.bf16 %v1440_v5  ;;  %v776_v5 = vld [vmem:[%s1572_s4] ss:$0 sm:$0xff] }
  0xea   : > { %v852_v11 = vpop.f32.mrf.mxu0  ;;  %919 = vmatmul.mubr.f32.vlgmr.msra.gmra.mxu0 %v502_v8 }
  0xeb   : > { %v438_v12 = vmax.f32 %v379_v9, 0.0  ;;  %921 = vmatprep.mubr.msk.f32.mxu0 %vm1107_vm0, %v1106_v1 }
  0xec   : > { %v383_v13 = vpop.f32.mrf.mxu0 }
  0xed   : > { %v384_v14 = vadd.f32 %v1434_v62, %v383_v13  ;;  %v503_v15 = vsel %vm267_vm1, %v438_v12, %v1042_v10 }
  0xee   : > { %v855_v16 = vpop.f32.mrf.mxu0  ;;  %922 = vmatmul.mubr.f32.gmra.mxu0 %v503_v15 }
  0xef   : > { %v439_v17 = vmax.f32 %v384_v14, 0.0 }
  0xf0   : > { %v388_v18 = vpop.f32.mrf.mxu0 }
  0xf1   : > { %v389_v19 = vadd.f32 %v1434_v62, %v388_v18  ;;  %v504_v20 = vsel %vm267_vm1, %v439_v17, %v468_v53 }
  0xf2   : > { %v858_v21 = vpop.f32.mrf.mxu0  ;;  %925 = vmatmul.mubr.f32.vlgmr.msra.gmra.mxu1 %v504_v20 }
  0xf3   : > { %v440_v22 = vmax.f32 %v389_v19, 0.0  ;;  %927 = vmatprep.mubr.msk.f32.mxu1 %vm1107_vm0, %v1106_v1 }
  0xf4   : > { %v393_v23 = vpop.f32.mrf.mxu0 }
  0xf5   : > { %v394_v24 = vadd.f32 %v1434_v62, %v393_v23  ;;  %v505_v25 = vsel %vm267_vm1, %v440_v22, %v470_v55 }
  0xf6   : > { %v861_v26 = vpop.f32.mrf.mxu0  ;;  %928 = vmatmul.mubr.f32.gmra.mxu1 %v505_v25 }
  0xf7   : > { %v441_v27 = vmax.f32 %v394_v24, 0.0  ;;  %930 = vmatprep.mubr.msk.f32.mxu1 %vm1107_vm0, %v1106_v1 }
  0xf8   : > { %v398_v28 = vpop.f32.mrf.mxu0 }
  0xf9   : > { %v399_v29 = vadd.f32 %v1434_v62, %v398_v28  ;;  %v506_v30 = vsel %vm267_vm1, %v441_v27, %v472_v54 }
  0xfa   : > { %v864_v31 = vpop.f32.mrf.mxu0  ;;  %931 = vmatmul.mubr.f32.gmra.mxu1 %v506_v30 }
  0xfb   : > { %v442_v32 = vmax.f32 %v399_v29, 0.0  ;;  %933 = vmatprep.mubr.msk.f32.mxu1 %vm1107_vm0, %v1106_v1 }
  0xfc   : > { %v403_v33 = vpop.f32.mrf.mxu0 }
  0xfd   : > { %v404_v34 = vadd.f32 %v1434_v62, %v403_v33  ;;  %v507_v35 = vsel %vm267_vm1, %v442_v32, %v474_v56 }
  0xfe   : > { %v867_v36 = vpop.f32.mrf.mxu0  ;;  %934 = vmatmul.mubr.f32.gmra.mxu1 %v507_v35 }
  0xff   : > { %v443_v37 = vmax.f32 %v404_v34, 0.0  ;;  %936 = vmatprep.mubr.msk.f32.mxu1 %vm1107_vm0, %v1106_v1 }
 0x100   : > { %v408_v38 = vpop.f32.mrf.mxu0 }
 0x101   : > { %v409_v39 = vadd.f32 %v1434_v62, %v408_v38  ;;  %v508_v40 = vsel %vm267_vm1, %v443_v37, %v476_v57 }
 0x102   : > { %v870_v41 = vpop.f32.mrf.mxu0  ;;  %937 = vmatmul.mubr.f32.gmra.mxu1 %v508_v40 }
 0x103   : > { %v444_v42 = vmax.f32 %v409_v39, 0.0  ;;  %939 = vmatprep.mubr.msk.f32.mxu1 %vm1107_vm0, %v1106_v1 }
 0x104   : > { %v413_v43 = vpop.f32.mrf.mxu0 }
 0x105   : > { %v414_v44 = vadd.f32 %v1434_v62, %v413_v43  ;;  %v509_v45 = vsel %vm267_vm1, %v444_v42, %v1423_v58 }
 0x106   : > { %v873_v46 = vpop.f32.mrf.mxu0  ;;  %940 = vmatmul.mubr.f32.gmra.mxu1 %v509_v45 }
 0x107   : > { %v445_v47 = vmax.f32 %v414_v44, 0.0  ;;  %942 = vmatprep.mubr.msk.f32.mxu1 %vm1107_vm0, %v1106_v1 }
 0x108   : > { %v418_v48 = vpop.f32.mrf.mxu0 }
 0x109   : > { %v419_v49 = vadd.f32 %v1434_v62, %v418_v48  ;;  %v510_v50 = vsel %vm267_vm1, %v445_v47, %v1425_v59  ;;  %v1038_v59 = vunpack.i.h.bf16 %v1436_v63 }
 0x10a   : > { %v876_v51 = vpop.f32.mrf.mxu0  ;;  %943 = vmatmul.mubr.f32.gmra.mxu1 %v510_v50 }
 0x10b   : > { %v446_v52 = vmax.f32 %v419_v49, 0.0  ;;  %945 = vmatprep.mubr.msk.f32.mxu1 %vm1107_vm0, %v1106_v1 }
 0x10c   : > { %v423_v53 = vpop.f32.mrf.mxu0 }
 0x10d   : > { %v424_v54 = vadd.f32 %v1434_v62, %v423_v53  ;;  %v511_v55 = vsel %vm267_vm1, %v446_v52, %v1427_v60 }
 0x10e   : > { %v879_v56 = vpop.f32.mrf.mxu0  ;;  %946 = vmatmul.mubr.f32.gmra.mxu1 %v511_v55 }
 0x10f   : > { %v447_v57 = vmax.f32 %v424_v54, 0.0  ;;  %948 = vmatprep.mubr.msk.f32.mxu1 %vm1107_vm0, %v1106_v1 }
 0x110   : > { %v428_v58 = vpop.f32.mrf.mxu0 }
 0x111   : > { %v429_v0 = vadd.f32 %v1434_v62, %v428_v58  ;;  %v512_v2 = vsel %vm267_vm1, %v447_v57, %v1429_v61 }
 0x112   : > { %v882_v3 = vpop.f32.mrf.mxu0  ;;  %949 = vmatmul.mubr.f32.gmra.mxu1 %v512_v2 }
 0x113   : > { %v448_v4 = vmax.f32 %v429_v0, 0.0  ;;  %951 = vmatprep.mubr.msk.f32.mxu1 %vm1107_vm0, %v1106_v1 }
 0x114   : > { %v433_v60 = vpop.f32.mrf.mxu0 }
 0x115   : > { %v434_v7 = vadd.f32 %v1434_v62, %v433_v60  ;;  %v513_v63 = vsel %vm267_vm1, %v448_v4, %v1038_v59 }
 0x116   : > { %v885_v8 = vpop.f32.mrf.mxu0  ;;  %952 = vmatmul.mubr.f32.gmra.mxu1 %v513_v63 }
 0x117   : > { %v449_v9 = vmax.f32 %v434_v7, 0.0  ;;  %954 = vmatprep.mubr.msk.f32.mxu1 %vm1107_vm0, %v1106_v1 }
 0x119   : > { %v514_v61 = vsel %vm267_vm1, %v449_v9, %v1043_v6 }
 0x11a   : > { %955 = vmatmul.mubr.f32.gmra.mxu1 %v514_v61 }
 0x1aa   : > { %v604_v10 = vpop.f32.mrf.mxu0 }
 0x1ab   : > { %v605_v62 = vadd.f32 %v776_v5, %v604_v10 }
 0x1ac   : > { %v920_v11 = vpop.f32.mrf.mxu0 }
 0x1ad   : > { %668 = vst [vmem:[%s1502_s17] sm:$0xff] %v605_v62 }
 0x1ae   : > { %v609_v1 = vpop.f32.mrf.mxu0 }
 0x1af   : > { %v610_v12 = vadd.f32 %v776_v5, %v609_v1 }
 0x1b0   : > { %v923_v13 = vpop.f32.mrf.mxu0 }
 0x1b1   : > { %669 = vst [vmem:[%s1502_s17 + $0x8] sm:$0xff] %v610_v12 }
 0x1b2   : > { %v614_v14 = vpop.f32.mrf.mxu1 }
 0x1b3   : > { %v615_v15 = vadd.f32 %v776_v5, %v614_v14 }
 0x1b4   : > { %v926_v16 = vpop.f32.mrf.mxu1 }
 0x1b5   : > { %670 = vst [vmem:[%s1502_s17 + $0x10] sm:$0xff] %v615_v15 }
 0x1b6   : > { %v619_v17 = vpop.f32.mrf.mxu1 }
 0x1b7   : > { %v620_v18 = vadd.f32 %v776_v5, %v619_v17 }
 0x1b8   : > { %v929_v19 = vpop.f32.mrf.mxu1 }
 0x1b9   : > { %671 = vst [vmem:[%s1502_s17 + $0x18] sm:$0xff] %v620_v18 }
 0x1ba   : > { %v624_v20 = vpop.f32.mrf.mxu1 }
 0x1bb   : > { %v625_v21 = vadd.f32 %v776_v5, %v624_v20 }
 0x1bc   : > { %v932_v22 = vpop.f32.mrf.mxu1 }
 0x1bd   : > { %672 = vst [vmem:[%s1502_s17 + $0x20] sm:$0xff] %v625_v21 }
 0x1be   : > { %v629_v23 = vpop.f32.mrf.mxu1 }
 0x1bf   : > { %v630_v24 = vadd.f32 %v776_v5, %v629_v23 }
 0x1c0   : > { %v935_v25 = vpop.f32.mrf.mxu1 }
 0x1c1   : > { %673 = vst [vmem:[%s1502_s17 + $0x28] sm:$0xff] %v630_v24 }
 0x1c2   : > { %v634_v26 = vpop.f32.mrf.mxu1 }
 0x1c3   : > { %v635_v27 = vadd.f32 %v776_v5, %v634_v26 }
 0x1c4   : > { %v938_v28 = vpop.f32.mrf.mxu1 }
 0x1c5   : > { %674 = vst [vmem:[%s1502_s17 + $0x30] sm:$0xff] %v635_v27 }
 0x1c6   : > { %v639_v29 = vpop.f32.mrf.mxu1 }
 0x1c7   : > { %v640_v30 = vadd.f32 %v776_v5, %v639_v29 }
 0x1c8   : > { %v941_v31 = vpop.f32.mrf.mxu1 }
 0x1c9   : > { %675 = vst [vmem:[%s1502_s17 + $0x38] sm:$0xff] %v640_v30 }
 0x1ca   : > { %v644_v32 = vpop.f32.mrf.mxu1 }
 0x1cb   : > { %v645_v33 = vadd.f32 %v776_v5, %v644_v32 }
 0x1cc   : > { %v944_v34 = vpop.f32.mrf.mxu1 }
 0x1cd   : > { %676 = vst [vmem:[%s1502_s17 + $0x40] sm:$0xff] %v645_v33 }
 0x1ce   : > { %v649_v35 = vpop.f32.mrf.mxu1 }
 0x1cf   : > { %v650_v36 = vadd.f32 %v776_v5, %v649_v35 }
 0x1d0   : > { %v947_v37 = vpop.f32.mrf.mxu1 }
 0x1d1   : > { %677 = vst [vmem:[%s1502_s17 + $0x48] sm:$0xff] %v650_v36 }
 0x1d2   : > { %v654_v38 = vpop.f32.mrf.mxu1 }
 0x1d3   : > { %v655_v39 = vadd.f32 %v776_v5, %v654_v38 }
 0x1d4   : > { %v950_v40 = vpop.f32.mrf.mxu1 }
 0x1d5   : > { %678 = vst [vmem:[%s1502_s17 + $0x50] sm:$0xff] %v655_v39 }
 0x1d6   : > { %v659_v41 = vpop.f32.mrf.mxu1 }
 0x1d7   : > { %v660_v42 = vadd.f32 %v776_v5, %v659_v41 }
 0x1d8   : > { %v953_v43 = vpop.f32.mrf.mxu1 }
 0x1d9   : > { %679 = vst [vmem:[%s1502_s17 + $0x58] sm:$0xff] %v660_v42 }
 0x1da   : > { %v664_v44 = vpop.f32.mrf.mxu1 }
 0x1db   : > { %v665_v45 = vadd.f32 %v776_v5, %v664_v44 }
 0x1dc   : > { %v956_v46 = vpop.f32.mrf.mxu1 }
 0x1dd   : > { %680 = vst [vmem:[%s1502_s17 + $0x60] sm:$0xff] %v665_v45 }
 0x1de   : > { %1057 = shalt.err (!%p1054_p3)
}
 0x1df   : > { %s1058_s11 = scalar_lea.hbm %s1521_s6, 1664  ;;  %s1062_s15 = scalar_lea.hbm %s1573_s5, 3328 }
 0x1e0   : > { %p1059_p4 = scmp.ne.s32.totalorder %s1521_s6, %s1058_s11  ;;  %p1063_p9 = scmp.lt.s32.totalorder %s1521_s6, %s1573_s5 }
 0x1e1   : > { %p1064_p10 = scmp.lt.s32.totalorder %s1062_s15, %s1058_s11 }
 0x1e2   : > { %p1060_p7 = pnand %p1059_p4, %p1180_p5 }
 0x1e3   : > { %p1065_p11 = por %p1064_p10, %p1063_p9 }
 0x1e4   : > { %p1061_p8 = pneg %p1060_p7 }
 0x1e6   : > { %p1066_p12 = pnand %p1065_p11, %p1061_p8 }
 0x1e8   : > { %1069 = shalt.err (!%p1066_p12)
}
 0x1e9   : > { %s1110_s17 = smov 128   ;;  %s1111_s23 = smov 8  }
 0x1ea   : > { %990 = dma.vmem_to_hbm [thread:$0]  (%p1180_p5), %s1523_s25, 1664, %s1521_s6, %s1528_s22, %s1110_s17, %s1110_s17, %s1111_s23  }
 0x1eb PF: > { %p996_p13 = scmp.ge.s32.totalorder %s1104_s21, 2  ;;  %s710_s26 = sand.u32 1, %s1092_s18  }
 0x1ec   : > { %s711_s30 = scalar_lea.sflag [#allocation3], %s710_s26 }
 0x1ed   : > { %p993_p0 = pnand %p996_p13, %p1184_p6 }
 0x1ef   : > { %p994_p1 = pneg %p993_p0 }
 0x1f1   : > { %1087 = dma.done.wait (%p994_p1), %s711_s30, 1664  }
 0x1f2   : > { %1089 = vsyncadd (%p994_p1), %s711_s30, 4294965632  ;;  %p15_p2 = scmp.ge.s32.totalorder %s1167_s24, 4   ;;  %s1576_s18 = smov %s1096_s19 }
 0x1f3   : > { %s1577_s19 = smov %s1100_s20  ;;  %s1578_s20 = smov %s1178_s27 }
 0x1f4   : > { %s1579_s21 = smov %s1167_s24  ;;  %17 = sbr.rel (!%p15_p2) target bundleno = 3 (0x3), region = 75 }
 0x1f9   :  { %716 = vsyncpa [#allocation3], 1 }
 0x1fa   :  { %718 = vsyncpa [#allocation3 + $0x1], 1 }

</bundles_post_ra>
